<compile_context>
chip_gen: v5e
topology: v5e:2x2
jax: 0.10.0
libtpu: 0.0.40
codegen_flags: <defaults>
</compile_context>

<pallas_src>
from functools import partial

import jax
import jax.numpy as jnp
from jax import lax
from jax.experimental import pallas as pl
from jax.experimental.pallas import tpu as pltpu

_NEG = -1e30  # "minus infinity" for masked scores (exp underflows to exactly 0)


def _round_up(x, m):
    return (x + m - 1) // m * m


def _default_vmem_limit_bytes():
    """~75% of physical VMEM (96 MiB on v5e/v6e, ~48 MiB on v7x)."""
    try:
        info = pltpu.get_tpu_info()
        cap = getattr(info, "vmem_capacity_bytes", None)
        if cap:
            return int(min(cap * 3 // 4, 100 * 1024 * 1024))
    except Exception:
        pass
    return 64 * 1024 * 1024


def _dilated_swa_kernel(
    # inputs
    q_ref, k_ref, v_ref, voff_ref, mask_ref,
    # output
    o_ref,
    # scratch
    m_sc, l_sc, acc_sc,
    *, seq_len, n_k_blocks, nb_halo, qk_ratio):
    qi = pl.program_id(1)          # query tile index
    kb = pl.program_id(2)          # position inside the key band (reduction axis)

    # ---- init (once per query tile) ------------------------------------------
    @pl.when(kb == 0)
    def _init():
        # m starts at 0: the softmax row always contains the implicit zero
        # scores; shift-invariance keeps this exact even when the window covers
        # every key.
        m_sc[...] = jnp.zeros_like(m_sc)
        l_sc[...] = jnp.zeros_like(l_sc)
        acc_sc[...] = jnp.zeros_like(acc_sc)

    kb_glob = qi * qk_ratio - nb_halo + kb          # intended key block (may be OOB)

    # ---- band block: scores + online softmax over the band -------------------
    @pl.when((kb_glob >= 0) & (kb_glob < n_k_blocks))
    def _compute():
        # scores: contract the head dim directly (no explicit transpose)
        s = lax.dot_general(q_ref[0], k_ref[0], (((1,), (1,)), ((), ())),
                            preferred_element_type=jnp.float32)
        mask = mask_ref[0]                           # f32 {1,0}, precomputed per kb
        s = jnp.where(mask != 0.0, s, _NEG)

        m_prev = m_sc[...]
        m_new = jnp.maximum(m_prev, jnp.max(s, axis=-1, keepdims=True))
        alpha = jnp.exp(m_prev - m_new)
        em = jnp.exp(-m_new)
        p = jnp.exp(s - m_new)                       # f32; off-window entries are 0
        # denominator: subtract exp(-m) on the window so finalize can add
        # exp(-m)*S for the implicit zero scores (pure f32 path)
        l_sc[...] = alpha * l_sc[...] + jnp.sum(p - mask * em, axis=-1, keepdims=True)
        # numerator: standard flash bf16 PV matmul (no analytic term inside bf16)
        acc_sc[...] = alpha * acc_sc[...] + jnp.dot(
            p.astype(jnp.bfloat16), v_ref[0], preferred_element_type=jnp.float32)
        m_sc[...] = m_new

    # ---- finalize: add the analytic contribution of the zero scores ----------
    @pl.when(kb == pl.num_programs(2) - 1)
    def _finalize():
        em = jnp.exp(-m_sc[...])                      # (TQ, 1)
        num = acc_sc[...] + em * voff_ref[0]          # voff is exact f32 per row
        den = l_sc[...] + em * float(seq_len)
        o_ref[0] = (num * pl.reciprocal(den, approx=True)).astype(o_ref.dtype)


def dilated_swa(x, wq, bq, wk, bk, wv, bv, *, window_size, dilation,
                block_q=256, block_k=None, vmem_limit_bytes=None):
    """Banded dilated sliding-window attention (Pallas TPU).

    block_q: query tile (256 for v6e/v7x, 128 for v5e).
    block_k: key tile / band granularity (defaults to block_q; use 128 with
             block_q=256 when dilation is large).
    """
    B, S, E = x.shape
    Dq = wq.shape[1]
    Dv = wv.shape[1]

    block_q = min(block_q, S)
    block_k = block_q if block_k is None else min(block_k, block_q)
    assert S % block_q == 0, "seq length must be a multiple of block_q"
    assert S % block_k == 0, "seq length must be a multiple of block_k"
    assert block_q % block_k == 0, "block_q must be a multiple of block_k"
    assert (block_q % 8 == 0 or block_q == S) and (block_k % 8 == 0 or block_k == S)

    radius = (window_size // 2) * dilation
    qk_ratio = block_q // block_k
    n_q_blocks = S // block_q
    n_k_blocks = S // block_k
    nb_halo = (radius + block_k - 1) // block_k       # key-block halo per side
    n_key_blocks = qk_ratio + 2 * nb_halo             # band width in key blocks

    # lane-dense padded head dims (zero padding is exact: padded Q/K columns
    # add 0 to scores, padded V columns produce 0 and are sliced off below)
    dq_pad = _round_up(Dq, 128)
    dv_pad = _round_up(Dv, 128)

    # ---- projections hoisted out of the kernel (f32, plain XLA matmuls) ------
    f32 = jnp.float32
    xf = x.astype(f32)
    scale = 1.0 / (E ** 0.5)
    q = (xf @ wq.astype(f32) + bq.astype(f32)) * scale   # fold 1/sqrt(E) into Q
    k = xf @ wk.astype(f32) + bk.astype(f32)
    v = xf @ wv.astype(f32) + bv.astype(f32)

    # voff[b, i] = sum_all V - sum over valid in-window keys of row i (exact f32)
    offsets = [(t - window_size // 2) * dilation for t in range(window_size)]
    i_idx = jnp.arange(S)
    v_on = jnp.zeros_like(v)
    for di in offsets:                                    # static, window_size iters
        ok = ((i_idx + di) >= 0) & ((i_idx + di) < S)
        v_on = v_on + jnp.where(ok[None, :, None], jnp.roll(v, shift=-di, axis=1), 0.0)
    v_off = jnp.sum(v, axis=1, keepdims=True) - v_on      # (B, S, Dv) f32

    q_p = jnp.pad(q, ((0, 0), (0, 0), (0, dq_pad - Dq))).astype(jnp.bfloat16)
    k_p = jnp.pad(k, ((0, 0), (0, 0), (0, dq_pad - Dq))).astype(jnp.bfloat16)
    v_p = jnp.pad(v, ((0, 0), (0, 0), (0, dv_pad - Dv))).astype(jnp.bfloat16)
    voff_p = jnp.pad(v_off, ((0, 0), (0, 0), (0, dv_pad - Dv)))   # stays f32

    # precomputed dilated-window mask per band slot kb (depends only on kb):
    # diff = key_index - query_index = (kb - nb_halo)*block_k + c - r
    kb_arr = jnp.arange(n_key_blocks)[:, None, None]
    r = jnp.arange(block_q)[None, :, None]
    c = jnp.arange(block_k)[None, None, :]
    diff = (kb_arr - nb_halo) * block_k + c - r
    band_mask = (((diff % dilation) == 0) &
                 (jnp.abs(diff) <= radius)).astype(jnp.float32)   # (n_key_blocks, TQ, TK)

    kernel = partial(_dilated_swa_kernel, seq_len=S, n_k_blocks=n_k_blocks,
                     nb_halo=nb_halo, qk_ratio=qk_ratio)

    def q_map(b, qi, kb):
        return (b, qi, 0)

    def band_map(b, qi, kb):
        # clamp out-of-range band blocks into [0, n_k_blocks); the kernel skips
        # them with pl.when, so the clamped data is never used.
        blk = qi * qk_ratio - nb_halo + kb
        blk = jnp.maximum(0, jnp.minimum(blk, n_k_blocks - 1))
        return (b, blk, 0)

    def mask_map(b, qi, kb):
        return (kb, 0, 0)

    if vmem_limit_bytes is None:
        vmem_limit_bytes = _default_vmem_limit_bytes()

    out = pl.pallas_call(
        kernel,
        out_shape=jax.ShapeDtypeStruct((B, S, dv_pad), jnp.float32),
        grid_spec=pltpu.PrefetchScalarGridSpec(
            num_scalar_prefetch=0,
            grid=(B, n_q_blocks, n_key_blocks),
            in_specs=[
                pl.BlockSpec((1, block_q, dq_pad), q_map),       # Q tile (bf16, pre-scaled)
                pl.BlockSpec((1, block_k, dq_pad), band_map),    # K band block (bf16)
                pl.BlockSpec((1, block_k, dv_pad), band_map),    # V band block (bf16)
                pl.BlockSpec((1, block_q, dv_pad), q_map),       # voff per row (f32)
                pl.BlockSpec((1, block_q, block_k), mask_map),   # precomputed band mask
            ],
            out_specs=pl.BlockSpec((1, block_q, dv_pad), q_map),
            scratch_shapes=[
                pltpu.VMEM((block_q, 1), jnp.float32),       # running max m
                pltpu.VMEM((block_q, 1), jnp.float32),       # running sum l
                pltpu.VMEM((block_q, dv_pad), jnp.float32),  # output accumulator
            ]),
        compiler_params=pltpu.CompilerParams(
            dimension_semantics=("parallel", "parallel", "arbitrary"),
            vmem_limit_bytes=vmem_limit_bytes),
    )(q_p, k_p, v_p, voff_p, band_mask)

    if dv_pad != Dv:
        out = out[..., :Dv]
    return out


def reference(x, wq, bq, wk, bk, wv, bv, *, window_size, dilation):
    """Pure-JAX f32 replica of the PyTorch forward (zero off-window scores)."""
    B, S, E = x.shape
    q = x @ wq + bq
    k = x @ wk + bk
    v = x @ wv + bv
    scores = jnp.einsum('bqd,bkd->bqk', q, k) / (E ** 0.5)
    diff = jnp.arange(S)[None, :] - jnp.arange(S)[:, None]
    half = window_size // 2
    mask = ((diff % dilation) == 0) & (jnp.abs(diff) <= half * dilation)
    cols = jnp.where(mask[None, :, :], scores, 0.0)
    return jax.nn.softmax(cols, axis=-1) @ v


if __name__ == "__main__":
    # Small shapes; small tiles so the demo exercises several query tiles, the
    # band halo, edge clamping, decoupled TQ/TK, and a non-power-of-2 dilation.
    B, S, E = 2, 64, 32
    Q_dim, V_dim = 32, 32

    key = jax.random.PRNGKey(0)
    k0, k1, k2, k3, k4, k5, k6 = jax.random.split(key, 7)
    x  = jax.random.normal(k0, (B, S, E), jnp.float32)
    wq = 0.1 * jax.random.normal(k1, (E, Q_dim), jnp.float32)
    bq = 0.1 * jax.random.normal(k2, (1, Q_dim), jnp.float32)
    wk = 0.1 * jax.random.normal(k3, (E, Q_dim), jnp.float32)
    bk = 0.1 * jax.random.normal(k4, (1, Q_dim), jnp.float32)
    wv = 0.1 * jax.random.normal(k5, (E, V_dim), jnp.float32)
    bv = 0.1 * jax.random.normal(k6, (1, V_dim), jnp.float32)

    configs = [
        dict(window_size=5, dilation=2, block_q=32, block_k=16),   # TQ != TK
        dict(window_size=7, dilation=3, block_q=16, block_k=16),   # non-pow2 dilation
    ]
    for cfg in configs:
        out = dilated_swa(x, wq, bq, wk, bk, wv, bv, **cfg)
        out = jax.block_until_ready(out)
        ref = reference(x, wq, bq, wk, bk, wv, bv,
                        window_size=cfg["window_size"], dilation=cfg["dilation"])
        assert out.shape == (B, S, V_dim), out.shape
        max_err = float(jnp.max(jnp.abs(out - ref)))
        # bf16 MXU score/PV matmuls (f32 accumulation) -> relaxed tolerance
        assert jnp.allclose(out, ref, atol=2e-2, rtol=2e-2), (cfg, max_err)

    print("KERNEL_OK")
</pallas_src>

<mosaic_0001>
module attributes {stable_mosaic.version = 11 : i64} {
  func.func @_dilated_swa_kernel(%arg0: i32, %arg1: i32, %arg2: i32, %arg3: memref<1x32x128xbf16, #tpu.memory_space<vmem>>, %arg4: memref<1x16x128xbf16, #tpu.memory_space<vmem>>, %arg5: memref<1x16x128xbf16, #tpu.memory_space<vmem>>, %arg6: memref<1x32x128xf32, #tpu.memory_space<vmem>>, %arg7: memref<1x32x16xf32, #tpu.memory_space<vmem>>, %arg8: memref<1x32x128xf32, #tpu.memory_space<vmem>>, %arg9: memref<32x1xf32, #tpu.memory_space<vmem>>, %arg10: memref<32x1xf32, #tpu.memory_space<vmem>>, %arg11: memref<32x128xf32, #tpu.memory_space<vmem>>) attributes {dimension_semantics = [#tpu.dimension_semantics<parallel>, #tpu.dimension_semantics<parallel>, #tpu.dimension_semantics<arbitrary>], iteration_bounds = array<i64: 2, 2, 4>, scalar_prefetch = 0 : i64, scratch_operands = 3 : i64, tpu.core_type = #tpu.core_type<tc>, window_params = [{transform_indices = @transform_0, window_bounds = array<i64: 1, 32, 128>}, {transform_indices = @transform_1, window_bounds = array<i64: 1, 16, 128>}, {transform_indices = @transform_2, window_bounds = array<i64: 1, 16, 128>}, {transform_indices = @transform_3, window_bounds = array<i64: 1, 32, 128>}, {transform_indices = @transform_4, window_bounds = array<i64: 1, 32, 16>}, {transform_indices = @transform_5, window_bounds = array<i64: 1, 32, 128>}]} {
    %c0_i32 = arith.constant 0 : i32
    %0 = arith.cmpi eq, %arg2, %c0_i32 : i32
    %1 = arith.extui %0 : i1 to i32
    %c0_i32_0 = arith.constant 0 : i32
    %2 = arith.cmpi ne, %1, %c0_i32_0 : i32
    scf.if %2 {
      %cst = arith.constant 0.000000e+00 : f32
      %14 = vector.broadcast %cst : f32 to vector<32x1xf32>
      %c0 = arith.constant 0 : index
      %c0_4 = arith.constant 0 : index
      %15 = vector.load %arg9[%c0, %c0_4] : memref<32x1xf32, #tpu.memory_space<vmem>>, vector<32x1xf32>
      tpu.vector_store %arg9[%c0, %c0_4], %14 {strides = array<i32>} : memref<32x1xf32, #tpu.memory_space<vmem>>, vector<32x1xf32>,
      %cst_5 = arith.constant 0.000000e+00 : f32
      %16 = vector.broadcast %cst_5 : f32 to vector<32x1xf32>
      %c0_6 = arith.constant 0 : index
      %c0_7 = arith.constant 0 : index
      %17 = vector.load %arg10[%c0_6, %c0_7] : memref<32x1xf32, #tpu.memory_space<vmem>>, vector<32x1xf32>
      tpu.vector_store %arg10[%c0_6, %c0_7], %16 {strides = array<i32>} : memref<32x1xf32, #tpu.memory_space<vmem>>, vector<32x1xf32>,
      %cst_8 = arith.constant 0.000000e+00 : f32
      %18 = vector.broadcast %cst_8 : f32 to vector<32x128xf32>
      %c0_9 = arith.constant 0 : index
      %c0_10 = arith.constant 0 : index
      %19 = vector.load %arg11[%c0_9, %c0_10] : memref<32x128xf32, #tpu.memory_space<vmem>>, vector<32x128xf32>
      tpu.vector_store %arg11[%c0_9, %c0_10], %18 {strides = array<i32>} : memref<32x128xf32, #tpu.memory_space<vmem>>, vector<32x128xf32>,
    } else {
    }
    %c2_i32 = arith.constant 2 : i32
    %3 = arith.muli %arg1, %c2_i32 : i32
    %c1_i32 = arith.constant 1 : i32
    %4 = arith.subi %3, %c1_i32 : i32
    %5 = arith.addi %4, %arg2 : i32
    %c0_i32_1 = arith.constant 0 : i32
    %6 = arith.cmpi sge, %5, %c0_i32_1 : i32
    %c4_i32 = arith.constant 4 : i32
    %7 = arith.cmpi slt, %5, %c4_i32 : i32
    %8 = arith.andi %6, %7 : i1
    %9 = arith.extui %8 : i1 to i32
    %c0_i32_2 = arith.constant 0 : i32
    %10 = arith.cmpi ne, %9, %c0_i32_2 : i32
    scf.if %10 {
      %c0 = arith.constant 0 : index
      %c0_4 = arith.constant 0 : index
      %c0_5 = arith.constant 0 : index
      %14 = vector.load %arg3[%c0, %c0_4, %c0_5] : memref<1x32x128xbf16, #tpu.memory_space<vmem>>, vector<1x32x128xbf16>
      %15 = vector.shape_cast %14 : vector<1x32x128xbf16> to vector<32x128xbf16>
      %c0_6 = arith.constant 0 : index
      %c0_7 = arith.constant 0 : index
      %c0_8 = arith.constant 0 : index
      %16 = vector.load %arg4[%c0_6, %c0_7, %c0_8] : memref<1x16x128xbf16, #tpu.memory_space<vmem>>, vector<1x16x128xbf16>
      %17 = vector.shape_cast %16 : vector<1x16x128xbf16> to vector<16x128xbf16>
      %cst = arith.constant dense<0.000000e+00> : vector<32x16xf32>
      %18 = tpu.matmul %15, %17, %cst {dimension_numbers = #tpu.dot_dimension_numbers<[1], [1], [0], [0], [0, 0, 1, 0], [], []>} : vector<32x128xbf16>, vector<16x128xbf16>, vector<32x16xf32> -> vector<32x16xf32>
      %c0_9 = arith.constant 0 : index
      %c0_10 = arith.constant 0 : index
      %c0_11 = arith.constant 0 : index
      %19 = vector.load %arg7[%c0_9, %c0_10, %c0_11] : memref<1x32x16xf32, #tpu.memory_space<vmem>>, vector<1x32x16xf32>
      %20 = vector.shape_cast %19 : vector<1x32x16xf32> to vector<32x16xf32>
      %cst_12 = arith.constant 0.000000e+00 : f32
      %21 = vector.broadcast %cst_12 : f32 to vector<32x16xf32>
      %22 = arith.cmpf one, %20, %21 : vector<32x16xf32>
      %cst_13 = arith.constant -1.000000e+30 : f32
      %23 = vector.broadcast %cst_13 : f32 to vector<32x16xf32>
      %24 = arith.select %22, %18, %23 : vector<32x16xi1>, vector<32x16xf32>
      %c0_14 = arith.constant 0 : index
      %c0_15 = arith.constant 0 : index
      %25 = vector.load %arg9[%c0_14, %c0_15] : memref<32x1xf32, #tpu.memory_space<vmem>>, vector<32x1xf32>
      %cst_16 = arith.constant dense<0xFF800000> : vector<32xf32>
      %26 = vector.multi_reduction <maximumf>, %24, %cst_16 [1] : vector<32x16xf32> to vector<32xf32>
      %27 = vector.shape_cast %26 : vector<32xf32> to vector<32x1xf32>
      %28 = arith.maximumf %25, %27 : vector<32x1xf32>
      %29 = arith.subf %25, %28 : vector<32x1xf32>
      %30 = math.exp %29 : vector<32x1xf32>
      %cst_17 = arith.constant 0.000000e+00 : f32
      %31 = vector.broadcast %cst_17 : f32 to vector<32x1xf32>
      %32 = arith.subf %31, %28 : vector<32x1xf32>
      %33 = math.exp %32 : vector<32x1xf32>
      %34 = vector.broadcast %28 : vector<32x1xf32> to vector<32x16xf32>
      %35 = arith.subf %24, %34 : vector<32x16xf32>
      %36 = math.exp %35 : vector<32x16xf32>
      %c0_18 = arith.constant 0 : index
      %c0_19 = arith.constant 0 : index
      %37 = vector.load %arg10[%c0_18, %c0_19] : memref<32x1xf32, #tpu.memory_space<vmem>>, vector<32x1xf32>
      %38 = arith.mulf %30, %37 : vector<32x1xf32>
      %39 = vector.broadcast %33 : vector<32x1xf32> to vector<32x16xf32>
      %40 = arith.mulf %20, %39 : vector<32x16xf32>
      %41 = arith.subf %36, %40 : vector<32x16xf32>
      %cst_20 = arith.constant dense<0.000000e+00> : vector<32xf32>
      %42 = vector.multi_reduction <add>, %41, %cst_20 [1] : vector<32x16xf32> to vector<32xf32>
      %43 = vector.shape_cast %42 : vector<32xf32> to vector<32x1xf32>
      %44 = arith.addf %38, %43 : vector<32x1xf32>
      %c0_21 = arith.constant 0 : index
      %c0_22 = arith.constant 0 : index
      %45 = vector.load %arg10[%c0_21, %c0_22] : memref<32x1xf32, #tpu.memory_space<vmem>>, vector<32x1xf32>
      tpu.vector_store %arg10[%c0_21, %c0_22], %44 {strides = array<i32>} : memref<32x1xf32, #tpu.memory_space<vmem>>, vector<32x1xf32>,
      %c0_23 = arith.constant 0 : index
      %c0_24 = arith.constant 0 : index
      %46 = vector.load %arg11[%c0_23, %c0_24] : memref<32x128xf32, #tpu.memory_space<vmem>>, vector<32x128xf32>
      %47 = vector.broadcast %30 : vector<32x1xf32> to vector<32x128xf32>
      %48 = arith.mulf %47, %46 : vector<32x128xf32>
      %49 = arith.truncf %36 : vector<32x16xf32> to vector<32x16xbf16>
      %c0_25 = arith.constant 0 : index
      %c0_26 = arith.constant 0 : index
      %c0_27 = arith.constant 0 : index
      %50 = vector.load %arg5[%c0_25, %c0_26, %c0_27] : memref<1x16x128xbf16, #tpu.memory_space<vmem>>, vector<1x16x128xbf16>
      %51 = vector.shape_cast %50 : vector<1x16x128xbf16> to vector<16x128xbf16>
      %cst_28 = arith.constant dense<0.000000e+00> : vector<32x128xf32>
      %52 = tpu.matmul %49, %51, %cst_28 {dimension_numbers = #tpu.dot_dimension_numbers<[1], [0], [0], [1], [0, 0, 1, 1], [], []>} : vector<32x16xbf16>, vector<16x128xbf16>, vector<32x128xf32> -> vector<32x128xf32>
      %53 = arith.addf %48, %52 : vector<32x128xf32>
      %c0_29 = arith.constant 0 : index
      %c0_30 = arith.constant 0 : index
      %54 = vector.load %arg11[%c0_29, %c0_30] : memref<32x128xf32, #tpu.memory_space<vmem>>, vector<32x128xf32>
      tpu.vector_store %arg11[%c0_29, %c0_30], %53 {strides = array<i32>} : memref<32x128xf32, #tpu.memory_space<vmem>>, vector<32x128xf32>,
      %c0_31 = arith.constant 0 : index
      %c0_32 = arith.constant 0 : index
      %55 = vector.load %arg9[%c0_31, %c0_32] : memref<32x1xf32, #tpu.memory_space<vmem>>, vector<32x1xf32>
      tpu.vector_store %arg9[%c0_31, %c0_32], %28 {strides = array<i32>} : memref<32x1xf32, #tpu.memory_space<vmem>>, vector<32x1xf32>,
    } else {
    }
    %c3_i32 = arith.constant 3 : i32
    %11 = arith.cmpi eq, %arg2, %c3_i32 : i32
    %12 = arith.extui %11 : i1 to i32
    %c0_i32_3 = arith.constant 0 : i32
    %13 = arith.cmpi ne, %12, %c0_i32_3 : i32
    scf.if %13 {
      %c0 = arith.constant 0 : index
      %c0_4 = arith.constant 0 : index
      %14 = vector.load %arg9[%c0, %c0_4] : memref<32x1xf32, #tpu.memory_space<vmem>>, vector<32x1xf32>
      %cst = arith.constant 0.000000e+00 : f32
      %15 = vector.broadcast %cst : f32 to vector<32x1xf32>
      %16 = arith.subf %15, %14 : vector<32x1xf32>
      %17 = math.exp %16 : vector<32x1xf32>
      %c0_5 = arith.constant 0 : index
      %c0_6 = arith.constant 0 : index
      %18 = vector.load %arg11[%c0_5, %c0_6] : memref<32x128xf32, #tpu.memory_space<vmem>>, vector<32x128xf32>
      %c0_7 = arith.constant 0 : index
      %c0_8 = arith.constant 0 : index
      %c0_9 = arith.constant 0 : index
      %19 = vector.load %arg6[%c0_7, %c0_8, %c0_9] : memref<1x32x128xf32, #tpu.memory_space<vmem>>, vector<1x32x128xf32>
      %20 = vector.shape_cast %19 : vector<1x32x128xf32> to vector<32x128xf32>
      %21 = vector.broadcast %17 : vector<32x1xf32> to vector<32x128xf32>
      %22 = arith.mulf %21, %20 : vector<32x128xf32>
      %23 = arith.addf %18, %22 : vector<32x128xf32>
      %c0_10 = arith.constant 0 : index
      %c0_11 = arith.constant 0 : index
      %24 = vector.load %arg10[%c0_10, %c0_11] : memref<32x1xf32, #tpu.memory_space<vmem>>, vector<32x1xf32>
      %cst_12 = arith.constant 6.400000e+01 : f32
      %25 = vector.broadcast %cst_12 : f32 to vector<32x1xf32>
      %26 = arith.mulf %17, %25 : vector<32x1xf32>
      %27 = arith.addf %24, %26 : vector<32x1xf32>
      %28 = tpu.reciprocal %27 {approx = true} : vector<32x1xf32> -> vector<32x1xf32>
      %29 = vector.broadcast %28 : vector<32x1xf32> to vector<32x128xf32>
      %30 = arith.mulf %23, %29 : vector<32x128xf32>
      %c0_13 = arith.constant 0 : index
      %c0_14 = arith.constant 0 : index
      %c0_15 = arith.constant 0 : index
      %31 = vector.load %arg8[%c0_13, %c0_14, %c0_15] : memref<1x32x128xf32, #tpu.memory_space<vmem>>, vector<1x32x128xf32>
      %32 = vector.shape_cast %31 : vector<1x32x128xf32> to vector<32x128xf32>
      %33 = vector.shape_cast %30 : vector<32x128xf32> to vector<1x32x128xf32>
      tpu.vector_store %arg8[%c0_13, %c0_14, %c0_15], %33 {strides = array<i32>} : memref<1x32x128xf32, #tpu.memory_space<vmem>>, vector<1x32x128xf32>,
    } else {
    }
    return
  }
  func.func @transform_0(%arg0: i32, %arg1: i32, %arg2: i32) -> (i32, i32, i32) {
    %c0_i32 = arith.constant 0 : i32
    %c0_i32_0 = arith.constant 0 : i32
    return %arg0, %arg1, %c0_i32 : i32, i32, i32
  }
  func.func @transform_1(%arg0: i32, %arg1: i32, %arg2: i32) -> (i32, i32, i32) {
    %c2_i32 = arith.constant 2 : i32
    %0 = arith.muli %arg1, %c2_i32 : i32
    %c1_i32 = arith.constant 1 : i32
    %1 = arith.subi %0, %c1_i32 : i32
    %2 = arith.addi %1, %arg2 : i32
    %c3_i32 = arith.constant 3 : i32
    %3 = arith.minsi %2, %c3_i32 : i32
    %c0_i32 = arith.constant 0 : i32
    %4 = arith.maxsi %c0_i32, %3 : i32
    %c0_i32_0 = arith.constant 0 : i32
    %c0_i32_1 = arith.constant 0 : i32
    return %arg0, %4, %c0_i32_0 : i32, i32, i32
  }
  func.func @transform_2(%arg0: i32, %arg1: i32, %arg2: i32) -> (i32, i32, i32) {
    %c2_i32 = arith.constant 2 : i32
    %0 = arith.muli %arg1, %c2_i32 : i32
    %c1_i32 = arith.constant 1 : i32
    %1 = arith.subi %0, %c1_i32 : i32
    %2 = arith.addi %1, %arg2 : i32
    %c3_i32 = arith.constant 3 : i32
    %3 = arith.minsi %2, %c3_i32 : i32
    %c0_i32 = arith.constant 0 : i32
    %4 = arith.maxsi %c0_i32, %3 : i32
    %c0_i32_0 = arith.constant 0 : i32
    %c0_i32_1 = arith.constant 0 : i32
    return %arg0, %4, %c0_i32_0 : i32, i32, i32
  }
  func.func @transform_3(%arg0: i32, %arg1: i32, %arg2: i32) -> (i32, i32, i32) {
    %c0_i32 = arith.constant 0 : i32
    %c0_i32_0 = arith.constant 0 : i32
    return %arg0, %arg1, %c0_i32 : i32, i32, i32
  }
  func.func @transform_4(%arg0: i32, %arg1: i32, %arg2: i32) -> (i32, i32, i32) {
    %c0_i32 = arith.constant 0 : i32
    %c0_i32_0 = arith.constant 0 : i32
    %c0_i32_1 = arith.constant 0 : i32
    return %arg2, %c0_i32, %c0_i32_0 : i32, i32, i32
  }
  func.func @transform_5(%arg0: i32, %arg1: i32, %arg2: i32) -> (i32, i32, i32) {
    %c0_i32 = arith.constant 0 : i32
    %c0_i32_0 = arith.constant 0 : i32
    return %arg0, %arg1, %c0_i32 : i32, i32, i32
  }
}

</mosaic_0001>

<bundles_post_ra>
// kernel: tpu_custom_call.1
= control target key start
LH: loop header
LB: loop body
LE: loop exit
PB: predicated region body
PF: predicated region fallthrough
CT: control target
= control target key end

     0   :  { %s1953_s0 = inlined_call_operand.vmem [shape: bf16[2,64,128], index: 0, kind: input, shape index: {}]   ;;  %s1954_s1 = inlined_call_operand.hbm [shape: bf16[2,64,128], index: 1, kind: input, shape index: {}]   ;;  %s1955_s2 = inlined_call_operand.hbm [shape: bf16[2,64,128], index: 2, kind: input, shape index: {}]   ;;  %s1956_s3 = inlined_call_operand.vmem [shape: f32[2,64,128], index: 3, kind: input, shape index: {}]   ;;  %s1957_s4 = inlined_call_operand.vmem [shape: f32[4,32,16], index: 4, kind: input, shape index: {}]   ;;  %s1958_s5 = inlined_call_operand.hbm [shape: f32[2,64,128], index: 5, kind: output, shape index: {}]  }
   0x1   :  { %1971 = sst [smem:[#allocation26_spill]] %s1954_s1 }
   0x2   :  { %1972 = sst [smem:[#allocation27_spill]] %s1955_s2 }
   0x3   :  { %10 = vsyncpa [#allocation6], 0 }
   0x4   :  { %12 = vsyncpa [#allocation6 + $0x1], 0 }
   0x5   :  { %13 = vsyncpa [#allocation9], 0 }
   0x6   :  { %15 = vsyncpa [#allocation9 + $0x1], 0 }
   0x7   :  { %16 = vsyncpa [#allocation7], 0 }
   0x8   :  { %18 = vsyncpa [#allocation7 + $0x1], 0  ;;  %s1576_s18 = smov 0   ;;  %s1578_s19 = smov 0  }
   0x9   :  { %s1580_s20 = smov 0   ;;  %s1582_s21 = smov 0  }
   0xa   :  { %s1584_s22 = smov 0   ;;  %s1586_s23 = smov 0  }
   0xb   :  { %s1588_s24 = smov 0   ;;  %s1590_s25 = smov 0  }
   0xc   :  { %s1592_s26 = smov 0   ;;  %s1594_s27 = smov 0  }
   0xd   :  { %s1596_s28 = smov 0   ;;  %s1598_s29 = smov 0  }
   0xe   :  { %s1600_s30 = smov 0  }
   0xf LB: > { %1973 = sst [smem:[#allocation14_spill]] %s1489_s18  ;;  %s1961_s6 = sadd.s32 4294967295, %s1537_s30   ;;  %s1537_s30 = sphi %s1600_s30, %s24_s30   ;;  %s1533_s29 = sphi %s1598_s29, %s2009_s29   ;;  %s1529_s28 = sphi %s1596_s28, %s2008_s28   ;;  %s1525_s27 = sphi %s1594_s27, %s2007_s27   ;;  %s1521_s26 = sphi %s1592_s26, %s2006_s26   ;;  %s1517_s25 = sphi %s1590_s25, %s2016_s25   ;;  %s1513_s24 = sphi %s1588_s24, %s2015_s24   ;;  %s1509_s23 = sphi %s1586_s23, %s2003_s23   ;;  %s1505_s22 = sphi %s1584_s22, %s2014_s22   ;;  %s1501_s21 = sphi %s1582_s21, %s2013_s21   ;;  %s1497_s20 = sphi %s1580_s20, %s2001_s20   ;;  %s1493_s19 = sphi %s1578_s19, %s2012_s19   ;;  %s1489_s18 = sphi %s1576_s18, %s2011_s18  }
  0x10   : > { %1974 = sst [smem:[#allocation15_spill]] %s1497_s20  ;;  %s36_s8 = sadd.s32 1, %s1525_s27 }
  0x11   : > { %1975 = sst [smem:[#allocation16_spill]] %s1509_s23  ;;  %s39_s9 = sadd.s32 1, %s1529_s28 }
  0x12   : > { %1976 = sst [smem:[#allocation17_spill]] %s1525_s27  ;;  %p37_p0 = scmp.ge.s32.totalorder %s36_s8, 4 }
  0x13   : > { %1977 = sst [smem:[#allocation18_spill]] %s1529_s28  ;;  %s43_s10 = sadd.s32 1, %s1533_s29 }
  0x14   : > { %1978 = sst [smem:[#allocation19_spill]] %s1533_s29  ;;  %s1048_s11 = sshll.u32 %s1529_s28, 1 }
  0x15   : > { %s2018_s8 = smov (%p37_p0, %s36_s8), 0  ;;  %s2020_s9 = smov (!%p37_p0, %s39_s9), %s1529_s28 }
  0x16   : > { %1979 = sst [smem:[#allocation20_spill]] %s2018_s8  ;;  %s1049_s13 = sadd.s32 4294967295, %s1048_s11 }
  0x17   : > { %p101_p1 = scmp.ne.s32.totalorder %s1509_s23, %s1505_s22  ;;  %p41_p2 = scmp.ge.s32.totalorder %s2020_s9, 2 }
  0x18   : > { %s77_s14 = sadd.s32 %s1525_s27, %s1049_s13  ;;  %p102_p6 = scmp.eq.s32.totalorder %s1537_s30, 0 }
  0x19   : > { %p78_p3 = scmp.lt.s32.totalorder %s77_s14, 3  ;;  %p1050_p4 = scmp.gt.s32.totalorder %s77_s14, 0 }
  0x1a   : > { %s2022_s9 = smov (%p41_p2, %s2020_s9), 0  ;;  %s2024_s10 = smov (!%p41_p2, %s43_s10), %s1533_s29 }
  0x1b   : > { %1980 = sst [smem:[#allocation21_spill]] %s2022_s9  ;;  %s2026_s14 = smov (!%p78_p3, %s77_s14), 3 }
  0x1c   : > { %p45_p5 = scmp.ge.s32.totalorder %s2024_s10, 2  ;;  %s1055_s15 = sshll.u32 %s2022_s9, 1 }
  0x1d   : > { %s2028_s14 = smov (!%p1050_p4, %s2026_s14), 0  ;;  %s1056_s16 = sadd.s32 4294967295, %s1055_s15 }
  0x1e   : > { %s2030_s10 = smov (%p45_p5, %s2024_s10), 0  ;;  %s84_s17 = sadd.s32 %s1056_s16, %s2018_s8 }
  0x1f   : > { %1981 = sst [smem:[#allocation22_spill]] %s2030_s10  ;;  %s89_s11 = ssub.s32 %s1533_s29, %s2030_s10 }
  0x20   : > { %p85_p7 = scmp.lt.s32.totalorder %s84_s17, 3  ;;  %p1057_p8 = scmp.gt.s32.totalorder %s84_s17, 0 }
  0x21   : > { %p1669_p9 = por %p102_p6, %p101_p1  ;;  %p107_p10 = scmp.ne.s32.totalorder %s1505_s22, %s1501_s21 }
  0x22   : > { %s2032_s17 = smov (!%p85_p7, %s84_s17), 3  ;;  %p108_p11 = scmp.eq.s32.totalorder %s1961_s6, 0 }
  0x23   : > { %s214_s15 = ssub.s32 %s1529_s28, %s2022_s9  ;;  %s2034_s17 = smov (!%p1057_p8, %s2032_s17), 0 }
  0x24   : > { %p1679_p12 = por %p108_p11, %p107_p10  ;;  %s215_s7 = sor.u32 %s214_s15, %s89_s11 }
  0x25   : > { %s90_s12 = ssub.s32 %s2028_s14, %s2034_s17  ;;  %p216_p13 = scmp.eq.s32.totalorder %s215_s7, 0 }
  0x26   : > { %s91_s21 = sor.u32 %s90_s12, %s89_s11  ;;  %s218_s10 = sadd.s32 1, %s1497_s20 }
  0x27   : > { %p92_p0 = scmp.eq.s32.totalorder %s91_s21, 0  ;;  %p228_p1 = scmp.ne.s32.totalorder %s1497_s20, %s1493_s19 }
  0x28   : > { %s1688_s8 = scalar_select %p216_p13, %s1497_s20, %s218_s10  }
  0x29   : > { %s1985_s6 = sadd.s32 1, %s1509_s23  ;;  %s1987_s28 = sadd.s32 4294967295, %s1537_s30  }
  0x2a   : > { %1984 = sst [smem:[#allocation23_spill]] %s1688_s8  ;;  %p229_p2 = scmp.eq.s32.totalorder %s1987_s28, 15 }
  0x2b   : > { %s1693_s9 = scalar_select %p92_p0, %s1509_s23, %s1985_s6  }
  0x2c   : > { %p234_p3 = scmp.ne.s32.totalorder %s1493_s19, %s1489_s18  ;;  %s1988_s27 = sadd.s32 4294967294, %s1537_s30  }
  0x2d   : > { %1986 = sst [smem:[#allocation24_spill]] %s1693_s9  ;;  %p235_p4 = scmp.eq.s32.totalorder %s1988_s27, 15 }
  0x2e   : > { %p1701_p5 = por %p229_p2, %p228_p1  ;;  %p1176_p6 = scmp.lt.s32.totalorder %s1537_s30, 16 }
  0x2f   : > { %p1706_p7 = por %p235_p4, %p234_p3  ;;  %s1711_s10 = sand.u32 1, %s1509_s23  }
  0x30   : > { %s1078_s6 = sshll.u32 %s1711_s10, 3  ;;  %s1086_s12 = sshll.u32 %s2028_s14, 1 }
  0x31   : > { %s1990_s7 = scalar_select %p1706_p7, 1, 0 }
  0x32   : > { %s1087_s28 = sshll.u32 %s1533_s29, 3  ;;  %s272_s11 = scalar_lea.vmem [#allocation5], %s1078_s6 }
  0x33   : > { %1991 = sst [smem:[#allocation25_spill]] %s1990_s7  ;;  %s289_s27 = sshll.u32 %s272_s11, 4  ;;  %s290_s27 = int_to_ptr.vmem [resolvable:$true] %s289_s27 }
  0x34   : > { %s284_s15 = sadd.s32 %s1087_s28, %s1086_s12  ;;  %p1720_p8 = pnand %p1176_p6, %p1669_p9 }
  0x35   : > { %s1088_s21 = sshll.u32 %s284_s15, 2  ;;  %s1993_s1 = sld [smem:[#allocation26_spill]] }
  0x36   : > { %s269_s14 = scalar_lea.sflag [#allocation6], %s1711_s10  ;;  %p1339_p11 = pneg %p1720_p8 }
  0x3b   : > { %s286_s20 = scalar_lea.hbm %s1993_s1, %s1088_s21  ;;  %s1342_s23 = scalar_lea.hbm %s1993_s1, 64 }
  0x3c   : > { %s287_s7 = sshll.u32 %s286_s20, 4  ;;  %s288_s7 = int_to_ptr.hbm [resolvable:$true] %s287_s7 }
  0x3d   : > { %s1335_s29 = sshra.s32 %s288_s7, 4  ;;  %s1336_s29 = int_to_ptr.hbm [resolvable:$true] %s1335_s29 }
  0x3e   : > { %s1337_s11 = scalar_lea.hbm %s1336_s29, 8  ;;  %p1343_p0 = scmp.lt.s32.totalorder %s1336_s29, %s1993_s1 }
  0x3f   : > { %p1338_p10 = scmp.ne.s32.totalorder %s1336_s29, %s1337_s11  ;;  %p1344_p1 = scmp.lt.s32.totalorder %s1342_s23, %s1337_s11 }
  0x41   : > { %p1340_p9 = pnand %p1339_p11, %p1338_p10  ;;  %p1345_p2 = por %p1344_p1, %p1343_p0 }
  0x43   : > { %p1341_p13 = pneg %p1340_p9 }
  0x45   : > { %p1346_p3 = pnand %p1345_p2, %p1341_p13 }
  0x47   : > { %1349 = shalt.err (!%p1346_p3)
}
  0x48   : > { %s1539_s20 = smov 64   ;;  %s1540_s15 = smov 4  }
  0x49   : > { %1168 = dma.hbm_to_vmem [thread:$0]  (!%p1720_p8), %s288_s7, 128, %s290_s27, %s269_s14, %s1539_s20, %s1539_s20, %s1540_s15  }
  0x4a   : > { %p1100_p4 = scmp.ge.s32.totalorder %s1537_s30, 1  ;;  %p349_p6 = scmp.lt.s32.totalorder %s1537_s30, 17 }
  0x4b   : > { %s1995_s2 = sld [smem:[#allocation27_spill]]  ;;  %s303_s8 = scalar_lea.vmem [#allocation8], %s1078_s6 }
  0x4c   : > { %p1743_p10 = pnand %p1100_p4, %p349_p6  ;;  %s320_s28 = sshll.u32 %s303_s8, 4  ;;  %s321_s28 = int_to_ptr.vmem [resolvable:$true] %s320_s28 }
  0x4d   : > { %s300_s1 = scalar_lea.sflag [#allocation9], %s1711_s10 }
  0x51   : > { %s317_s12 = scalar_lea.hbm %s1995_s2, %s1088_s21  ;;  %s1372_s29 = scalar_lea.hbm %s1995_s2, 64 }
  0x52   : > { %s318_s23 = sshll.u32 %s317_s12, 4  ;;  %s319_s23 = int_to_ptr.hbm [resolvable:$true] %s318_s23 }
  0x53   : > { %s1365_s18 = sshra.s32 %s319_s23, 4  ;;  %s1366_s18 = int_to_ptr.hbm [resolvable:$true] %s1365_s18 }
  0x54   : > { %s1367_s7 = scalar_lea.hbm %s1366_s18, 8  ;;  %p1373_p1 = scmp.lt.s32.totalorder %s1366_s18, %s1995_s2 }
  0x55   : > { %p1368_p9 = scmp.ne.s32.totalorder %s1366_s18, %s1367_s7  ;;  %p1374_p2 = scmp.lt.s32.totalorder %s1372_s29, %s1367_s7 }
  0x57   : > { %p1370_p13 = pnand %p1368_p9, %p1339_p11  ;;  %p1375_p3 = por %p1374_p2, %p1373_p1 }
  0x59   : > { %p1371_p0 = pneg %p1370_p13 }
  0x5b   : > { %p1376_p4 = pnand %p1375_p3, %p1371_p0 }
  0x5d   : > { %1379 = shalt.err (!%p1376_p4)
}
  0x5e   : > { %1171 = dma.hbm_to_vmem [thread:$0]  (!%p1720_p8), %s319_s23, 128, %s321_s28, %s300_s1, %s1539_s20, %s1539_s20, %s1540_s15  }
  0x5f   : > { %353 = sbr.rel (%p1743_p10) target bundleno = 842 (0x34a), region = 40  ;;  %s355_s10 = sand.u32 (!%p1743_p10), 1, %s1505_s22  }
  0x60   : > { %s1101_s6 = sshll.u32 (!%p1743_p10), %s355_s10, 3  ;;  %s356_s12 = scalar_lea.sflag (!%p1743_p10), [#allocation6], %s355_s10 }
  0x61   : > { %s1767_s8 = scalar_lea.vmem (!%p1743_p10), [#allocation5], %s1101_s6 }
  0x64   : > { %1476 = dma.done.wait (%p1679_p12), %s356_s12, 128  }
  0x65   : > { %1478 = vsyncadd (%p1679_p12), %s356_s12, 4294967168  ;;  %s366_s18 = scalar_lea.sflag [#allocation9], %s355_s10  ;;  %s1773_s7 = scalar_lea.vmem [#allocation8], %s1101_s6 }
  0x66   : > { %1480 = dma.done.wait (%p1679_p12), %s366_s18, 128  }
  0x67   : > { %1482 = vsyncadd (%p1679_p12), %s366_s18, 4294967168  ;;  %s1970_s1 = sand.u32 1, %s1493_s19   ;;  %s1781_s9 = sshll.u32 %s1517_s25, 2 }
  0x68   : > { %s1103_s20 = sshll.u32 %s1970_s1, 5  ;;  %p426_p8 = scmp.lt.s32.totalorder %s1521_s26, 1 }
  0x69   : > { %p428_p11 = scmp.lt.s32.totalorder %s1781_s9, 7  ;;  %p461_p12 = scmp.lt.s32.totalorder %s1513_s24, 3 }
  0x6a   : > { %s427_s15 = scalar_select %p426_p8, %s1521_s26, 1 }
  0x6b   : > { %s429_s13 = scalar_select %p428_p11, %s1781_s9, 7 }
  0x6c   : > { %s1105_s16 = sshll.u32 %s427_s15, 3  ;;  %p1112_p6 = scmp.ne.s32.totalorder %s1513_s24, 0 }
  0x6d   : > { %s431_s23 = sadd.s32 %s1105_s16, %s429_s13  ;;  %s1806_s13 = scalar_lea.vmem [#allocation10], %s1103_s20 }
  0x6e   : > { %s1106_s28 = sshll.u32 %s431_s23, 2  ;;  %s1109_s27 = sshll.u32 %s431_s23, 3 }
  0x6f   : > { %s1793_s21 = scalar_lea.vmem %s1953_s0, %s1106_s28  ;;  %s1798_s6 = scalar_lea.vmem %s1956_s3, %s1109_s27 }
  0x70   : > { %s462_s12 = scalar_select %p461_p12, %s1513_s24, 3 }
  0x71   : > { %471 = sbr.rel (%p1112_p6) target bundleno = 131 (0x83), region = 52 }
  0x72   : > { %s1152_s18 = sshll.u32 %s462_s12, 5 }
  0x73   : > { %s1804_s15 = scalar_lea.vmem %s1957_s4, %s1152_s18 }
  0x76   : > { %vm472_vm0 = vcmask 7168   ;;  %v1541_v0 = vmov 0.0  }
  0x77   : > { %473 = vst.msk [vmem:[#allocation2] sm:$0xff] %vm472_vm0, %v1541_v0 }
  0x78   : > { %474 = vst.msk [vmem:[#allocation2 + $0x8] sm:$0xff] %vm472_vm0, %v1541_v0 }
  0x79   : > { %475 = vst.msk [vmem:[#allocation2 + $0x10] sm:$0xff] %vm472_vm0, %v1541_v0 }
  0x7a   : > { %476 = vst.msk [vmem:[#allocation2 + $0x18] sm:$0xff] %vm472_vm0, %v1541_v0 }
  0x7b   : > { %477 = vst.msk [vmem:[#allocation3] sm:$0xff] %vm472_vm0, %v1541_v0 }
  0x7c   : > { %478 = vst.msk [vmem:[#allocation3 + $0x8] sm:$0xff] %vm472_vm0, %v1541_v0 }
  0x7d   : > { %479 = vst.msk [vmem:[#allocation3 + $0x10] sm:$0xff] %vm472_vm0, %v1541_v0 }
  0x7e   : > { %480 = vst.msk [vmem:[#allocation3 + $0x18] sm:$0xff] %vm472_vm0, %v1541_v0 }
  0x7f   : > { %481 = vst [vmem:[#allocation4 + $0x10] sm:$0xff] %v1541_v0 }
  0x80   : > { %482 = vst [vmem:[#allocation4] sm:$0xff] %v1541_v0 }
  0x81   : > { %483 = vst [vmem:[#allocation4 + $0x18] sm:$0xff] %v1541_v0 }
  0x82   : > { %484 = vst [vmem:[#allocation4 + $0x8] sm:$0xff] %v1541_v0 }
  0x83 PF: > { %s1113_s2 = sshll.u32 %s1517_s25, 1 }
  0x84   : > { %s1114_s1 = sadd.s32 4294967295, %s1113_s2 }
  0x85   : > { %s487_s20 = sadd.s32 %s1513_s24, %s1114_s1 }
  0x86   : > { %p488_p10 = scmp.ge.s32.totalorder %s487_s20, 0  ;;  %p489_p9 = scmp.lt.s32.totalorder %s487_s20, 4 }
  0x88   : > { %p490_p13 = pnand %p489_p9, %p488_p10 }
  0x8a   : > { %493 = sbr.rel (%p490_p13) target bundleno = 670 (0x29e), region = 56 }
  0x8f   : > { %v1155_v1 = vld [vmem:[%s1767_s8] sm:$0xff]  ;;  %vm553_vm2 = vcmask 130048   ;;  %v1821_v7 = vld [vmem:[%s1804_s15 + $0x10] sm:$0xff]  ;;  %v1837_v15 = vld [vmem:[%s1804_s15 + $0x18] sm:$0xff]  ;;  %v1542_v20 = vmov 0   ;;  %vm678_vm6 = vcmask 7168  }
  0x90   : > { %525 = vmatpush.bf16.xpose.msra.mxu0 %v1155_v1  ;;  %1157 = vmatpush.bf16.xpose.msra.mxu2 %v1155_v1  ;;  %v1153_v2 = vld [vmem:[%s1793_s21] sm:$0xff]  ;;  %v1154_v3 = vld [vmem:[%s1793_s21 + $0x8] sm:$0xff]  ;;  %vm543_vm3 = vcmp.ne.f32.partialorder %v1821_v7, 0.0  ;;  %vm544_vm5 = vcmp.ne.f32.partialorder %v1837_v15, 0.0  ;;  %v551_v24 = vld [vmem:[#allocation2 + $0x10] sm:$0xff] }
  0x91   : > { %v1815_v4 = vld [vmem:[%s1804_s15] sm:$0xff]  ;;  %v1826_v9 = vld [vmem:[%s1804_s15 + $0x8] sm:$0xff]  ;;  %1290 = vset.pattern.permute.xlu0 %v1542_v20  ;;  %1289 = vset.pattern.permute.xlu2 %v1542_v20  ;;  %v552_v32 = vld [vmem:[#allocation2 + $0x18] sm:$0xff] }
  0x92   : > { %vm541_vm1 = vcmp.ne.f32.partialorder %v1815_v4, 0.0  ;;  %vm542_vm4 = vcmp.ne.f32.partialorder %v1826_v9, 0.0  ;;  %1291 = vset.pattern.permute.xlu1 %v1542_v20  ;;  %v549_v21 = vld [vmem:[#allocation2] sm:$0xff]  ;;  %v550_v26 = vld [vmem:[#allocation2 + $0x8] sm:$0xff]  ;;  %v1156_v57 = vld [vmem:[%s1773_s7] sm:$0xff] }
  0x93   : > { %1158 = vmatpush.bf16.msra.mxu3 %v1156_v57  ;;  %734 = vmatpush.bf16.msra.mxu1 %v1156_v57 }
  0x97   : > { %526 = vmatmul.bf16.vlgmr.msra.gmra.mxu0 %v1153_v2  ;;  %531 = vmatmul.bf16.vlgmr.msra.gmra.mxu2 %v1154_v3 }
 0x114   : > { %v527_v5 = vpop.f32.mrf.mxu0 }
 0x115   : > { %v1818_v6 = vsel %vm541_vm1, %v527_v5, -1e+30 }
 0x116   : > { %v554_v8 = vsel %vm553_vm2, %v1818_v6, -inf }
 0x117   : > { %555 = vmax.xlane.f32.xlu1 %v554_v8 }
 0x11a   : > { %v532_v10 = vpop.f32.mrf.mxu2 }
 0x11b   : > { %v1830_v11 = vsel %vm543_vm3, %v532_v10, -1e+30 }
 0x11c   : > { %v529_v12 = vpop.f32.mrf.mxu0  ;;  %v560_v13 = vsel %vm553_vm2, %v1830_v11, -inf }
 0x11d   : > { %v1834_v14 = vsel %vm542_vm4, %v529_v12, -1e+30  ;;  %561 = vmax.xlane.f32.xlu0 %v560_v13 }
 0x11e   : > { %v557_v16 = vsel %vm553_vm2, %v1834_v14, -inf }
 0x11f   : > { %558 = vmax.xlane.f32.xlu1 %v557_v16 }
 0x122   : > { %v534_v17 = vpop.f32.mrf.mxu2 }
 0x123   : > { %v1842_v18 = vsel %vm544_vm5, %v534_v17, -1e+30 }
 0x124   : > { %v563_v19 = vsel %vm553_vm2, %v1842_v18, -inf }
 0x125   : > { %564 = vmax.xlane.f32.xlu0 %v563_v19 }
 0x18a   : > { %v556_v22 = vpop.xlane.xlu1 %555 }
 0x18b   : > { %v566_v23 = vmax.f32 %v549_v21, %v556_v22 }
 0x18d   : > { %754 = vst.msk [vmem:[#allocation2] sm:$0xff] %vm678_vm6, %v566_v23  ;;  %596 = vperm.xlu0 %1290, %v566_v23   ;;  %v582_v30 = vsub.f32 0.0, %v566_v23  ;;  %v570_v50 = vsub.f32 %v549_v21, %v566_v23 }
 0x18f   : > { %v586_v34 = vmul.f32 1.442695, %v582_v30  ;;  %v574_v51 = vmul.f32 1.442695, %v570_v50 }
 0x190   : > { %v562_v25 = vpop.xlane.xlu0 %561 }
 0x191   : > { %v568_v27 = vmax.f32 %v551_v24, %v562_v25 }
 0x192   : > { %v559_v28 = vpop.xlane.xlu1 %558 }
 0x193   : > { %756 = vst.msk [vmem:[#allocation2 + $0x10] sm:$0xff] %vm678_vm6, %v568_v27  ;;  %v567_v29 = vmax.f32 %v550_v26, %v559_v28  ;;  %606 = vperm.xlu2 %1289, %v568_v27   ;;  %v584_v37 = vsub.f32 0.0, %v568_v27  ;;  %v572_v53 = vsub.f32 %v551_v24, %v568_v27 }
 0x195   : > { %v571_v31 = vsub.f32 %v550_v26, %v567_v29  ;;  %755 = vst.msk [vmem:[#allocation2 + $0x8] sm:$0xff] %vm678_vm6, %v567_v29  ;;  %601 = vperm.xlu1 %1291, %v567_v29   ;;  %v590_v40 = vmul.f32 1.442695, %v584_v37  ;;  %v583_v43 = vsub.f32 0.0, %v567_v29  ;;  %v578_v54 = vmul.f32 1.442695, %v572_v53 }
 0x197   : > { %v576_v33 = vmul.f32 1.442695, %v571_v31  ;;  %v588_v46 = vmul.f32 1.442695, %v583_v43  ;;  %v627_v43 = vld [vmem:[#allocation3 + $0x8] sm:$0xff] }
 0x198   : > { %v565_v35 = vpop.xlane.xlu0 %564 }
 0x199   : > { %1292 = vpow2.f32 %v576_v33  ;;  %v569_v36 = vmax.f32 %v552_v32, %v565_v35  ;;  %v628_v33 = vld [vmem:[#allocation3 + $0x10] sm:$0xff] }
 0x19a   : > { %1294 = vpow2.f32 %v586_v34  ;;  %v626_v34 = vld [vmem:[#allocation3] sm:$0xff] }
 0x19b   : > { %v573_v38 = vsub.f32 %v552_v32, %v569_v36  ;;  %757 = vst.msk [vmem:[#allocation2 + $0x18] sm:$0xff] %vm678_vm6, %v569_v36  ;;  %611 = vperm.xlu2 %1289, %v569_v36   ;;  %v585_v47 = vsub.f32 0.0, %v569_v36 }
 0x19d   : > { %v580_v39 = vmul.f32 1.442695, %v573_v38  ;;  %v592_v48 = vmul.f32 1.442695, %v585_v47 }
 0x19f   : > { %v1850_v41 = vpop.eup %1292  ;;  %1296 = vpow2.f32 %v580_v39 }
 0x1a0   : > { %694 = vperm.xlu0 %1290, %v1850_v41   ;;  %v1295_v42 = vpop.eup %1294  ;;  %1298 = vpow2.f32 %v590_v40  ;;  %v685_v40 = vld [vmem:[#allocation4 + $0x18] sm:$0xff]  ;;  %v631_v47 = vmul.f32 %v1850_v41, %v627_v43 }
 0x1a1   : > { %1300 = vpow2.f32 %v588_v46 }
 0x1a2   : > { %1302 = vpow2.f32 %v592_v48 }
 0x1a3   : > { %636 = vperm.xlu2 %1289, %v1295_v42   ;;  %1304 = vpow2.f32 %v574_v51  ;;  %v629_v51 = vld [vmem:[#allocation3 + $0x18] sm:$0xff] }
 0x1a4   : > { %1306 = vpow2.f32 %v578_v54  ;;  %v683_v54 = vld [vmem:[#allocation4 + $0x10] sm:$0xff] }
 0x1a5   : > { %v1853_v44 = vpop.eup %1296 }
 0x1a6   : > { %v1299_v45 = vpop.eup %1298  ;;  %v633_v53 = vmul.f32 %v1853_v44, %v629_v51 }
 0x1a7   : > { %v1301_v49 = vpop.eup %1300 }
 0x1a8   : > { %704 = vperm.xlu0 %1290, %v1853_v44   ;;  %v1303_v52 = vpop.eup %1302 }
 0x1a9   : > { %v1305_v55 = vpop.eup %1304 }
 0x1aa   : > { %v1307_v56 = vpop.eup %1306  ;;  %v630_v37 = vmul.f32 %v1305_v55, %v626_v34 }
 0x1ab   : > { %646 = vperm.xlu2 %1289, %v1299_v45  }
 0x1b3   : > { %641 = vperm.xlu2 %1289, %v1301_v49   ;;  %v686_v49 = vld [vmem:[#allocation4 + $0x8] sm:$0xff] }
 0x1bb   : > { %651 = vperm.xlu2 %1289, %v1303_v52  }
 0x1c3   : > { %689 = vperm.xlu2 %1289, %v1305_v55  }
 0x1cb   : > { %699 = vperm.xlu2 %1289, %v1307_v56  }
 0x1ed   : > { %v607_v58 = vpop.permute.xlu2 %606 }
 0x1ee   : > { %v616_v59 = vsub.f32 %v1830_v11, %v607_v58 }
 0x1f0   : > { %v622_v60 = vmul.f32 1.442695, %v616_v59 }
 0x1f2   : > { %1308 = vpow2.f32 %v622_v60 }
 0x1f5   : > { %v612_v61 = vpop.permute.xlu2 %611 }
 0x1f6   : > { %v617_v62 = vsub.f32 %v1842_v18, %v612_v61  ;;  %v684_v61 = vld [vmem:[#allocation4] sm:$0xff] }
 0x1f8   : > { %v624_v63 = vmul.f32 1.442695, %v617_v62  ;;  %v1309_v1 = vpop.eup %1308 }
 0x1fa   : > { %1310 = vpow2.f32 %v624_v63 }
 0x1fd   : > { %v637_v0 = vpop.permute.xlu2 %636 }
 0x1fe   : > { %v654_v18 = vmul.f32 %v637_v0, %v1815_v4 }
 0x1ff   : > { %v597_v2 = vpop.permute.xlu0 %596 }
 0x200   : > { %v1311_v3 = vpop.eup %1310  ;;  %v614_v5 = vsub.f32 %v1818_v6, %v597_v2 }
 0x201   : > { %v712_v8 = vpack.c.bf16 %v1311_v3, %v1309_v1 }
 0x202   : > { %v618_v10 = vmul.f32 1.442695, %v614_v5 }
 0x203   : > { %1132 = vmatmul.msk.bf16.vlgmr.msra.gmra.mxu3 %vm553_vm2, %v712_v8 }
 0x204   : > { %1312 = vpow2.f32 %v618_v10 }
 0x205   : > { %v647_v12 = vpop.permute.xlu2 %646 }
 0x206   : > { %v656_v11 = vmul.f32 %v647_v12, %v1821_v7 }
 0x207   : > { %v602_v13 = vpop.permute.xlu1 %601 }
 0x208   : > { %v615_v16 = vsub.f32 %v1834_v14, %v602_v13  ;;  %v660_v17 = vsub.f32 %v1309_v1, %v656_v11 }
 0x20a   : > { %v1313_v19 = vpop.eup %1312  ;;  %v620_v20 = vmul.f32 1.442695, %v615_v16  ;;  %v668_v21 = vsel %vm553_vm2, %v660_v17, 0.0 }
 0x20b   : > { %669 = vadd.xlane.f32.xlu0 %v668_v21  ;;  %v658_v6 = vsub.f32 %v1313_v19, %v654_v18 }
 0x20c   : > { %1314 = vpow2.f32 %v620_v20 }
 0x20d   : > { %v642_v22 = vpop.permute.xlu2 %641  ;;  %v662_v23 = vsel %vm553_vm2, %v658_v6, 0.0 }
 0x20e   : > { %663 = vadd.xlane.f32.xlu1 %v662_v23  ;;  %v655_v24 = vmul.f32 %v642_v22, %v1826_v9  ;;  %v632_v9 = vmul.f32 %v1307_v56, %v628_v33 }
 0x212   : > { %v1315_v7 = vpop.eup %1314  ;;  %v695_v30 = vpop.permute.xlu0 %694 }
 0x213   : > { %v711_v25 = vpack.c.bf16 %v1315_v7, %v1313_v19  ;;  %v659_v26 = vsub.f32 %v1315_v7, %v655_v24  ;;  %v708_v62 = vmul.f32 %v695_v30, %v684_v61 }
 0x215   : > { %1131 = vmatmul.msk.bf16.vlgmr.msra.gmra.mxu1 %vm553_vm2, %v711_v25  ;;  %v652_v14 = vpop.permute.xlu2 %651  ;;  %v665_v4 = vsel %vm553_vm2, %v659_v26, 0.0 }
 0x216   : > { %v657_v27 = vmul.f32 %v652_v14, %v1837_v15  ;;  %666 = vadd.xlane.f32.xlu2 %v665_v4 }
 0x218   : > { %v661_v28 = vsub.f32 %v1311_v3, %v657_v27 }
 0x21a   : > { %v671_v29 = vsel %vm553_vm2, %v661_v28, 0.0  ;;  %v705_v31 = vpop.permute.xlu0 %704 }
 0x21b   : > { %672 = vadd.xlane.f32.xlu1 %v671_v29  ;;  %v710_v52 = vmul.f32 %v705_v31, %v686_v49 }
 0x21d   : > { %v690_v32 = vpop.permute.xlu2 %689 }
 0x21e   : > { %v707_v59 = vmul.f32 %v690_v32, %v683_v54 }
 0x225   : > { %v700_v38 = vpop.permute.xlu2 %699 }
 0x226   : > { %v709_v42 = vmul.f32 %v700_v38, %v685_v40 }
 0x27e   : > { %v670_v35 = vpop.xlane.xlu0 %669 }
 0x27f   : > { %v676_v36 = vadd.f32 %v670_v35, %v632_v9 }
 0x281   : > { %681 = vst.msk [vmem:[#allocation3 + $0x10] sm:$0xff] %vm678_vm6, %v676_v36  ;;  %v664_v39 = vpop.xlane.xlu1 %663 }
 0x282   : > { %v674_v15 = vadd.f32 %v664_v39, %v630_v37 }
 0x284   : > { %679 = vst.msk [vmem:[#allocation3] sm:$0xff] %vm678_vm6, %v674_v15 }
 0x286   : > { %v741_v45 = vpop.f32.mrf.mxu3 }
 0x287   : > { %v748_v46 = vadd.f32 %v741_v45, %v709_v42 }
 0x289   : > { %752 = vst [vmem:[#allocation4 + $0x18] sm:$0xff] %v748_v46  ;;  %v667_v48 = vpop.xlane.xlu2 %666 }
 0x28a   : > { %v675_v50 = vadd.f32 %v667_v48, %v631_v47 }
 0x28c   : > { %680 = vst.msk [vmem:[#allocation3 + $0x8] sm:$0xff] %vm678_vm6, %v675_v50 }
 0x28e   : > { %v743_v55 = vpop.f32.mrf.mxu3  ;;  %v673_v56 = vpop.xlane.xlu1 %672 }
 0x28f   : > { %v749_v57 = vadd.f32 %v743_v55, %v710_v52  ;;  %v677_v58 = vadd.f32 %v673_v56, %v633_v53 }
 0x291   : > { %753 = vst [vmem:[#allocation4 + $0x8] sm:$0xff] %v749_v57 }
 0x292   : > { %682 = vst.msk [vmem:[#allocation3 + $0x18] sm:$0xff] %vm678_vm6, %v677_v58  ;;  %v736_v41 = vpop.f32.mrf.mxu1 }
 0x293   : > { %v746_v60 = vadd.f32 %v736_v41, %v707_v59 }
 0x295   : > { %750 = vst [vmem:[#allocation4 + $0x10] sm:$0xff] %v746_v60 }
 0x29a   : > { %v738_v63 = vpop.f32.mrf.mxu1 }
 0x29b   : > { %v747_v0 = vadd.f32 %v738_v63, %v708_v62 }
 0x29d   : > { %751 = vst [vmem:[#allocation4] sm:$0xff] %v747_v0 }
 0x29e PF: > { %p1133_p0 = scmp.ne.s32.totalorder %s1513_s24, 3 }
 0x2a0   : > { %761 = sbr.rel (%p1133_p0) target bundleno = 824 (0x338), region = 60 }
 0x2a5   : > { %v764_v44 = vld [vmem:[#allocation2 + $0x10] sm:$0xff]  ;;  %v762_v1 = vld [vmem:[#allocation2] sm:$0xff]  ;;  %v1543_v2 = vmov 0   ;;  %v765_v8 = vld [vmem:[#allocation2 + $0x18] sm:$0xff] }
 0x2a6   : > { %1317 = vset.pattern.permute.xlu1 %v1543_v2  ;;  %1316 = vset.pattern.permute.xlu0 %v1543_v2  ;;  %v768_v3 = vsub.f32 0.0, %v764_v44  ;;  %v766_v5 = vsub.f32 0.0, %v762_v1  ;;  %v763_v10 = vld [vmem:[#allocation2 + $0x8] sm:$0xff]  ;;  %v769_v12 = vsub.f32 0.0, %v765_v8  ;;  %v814_v6 = vld [vmem:[#allocation3] sm:$0xff]  ;;  %v816_v23 = vld [vmem:[#allocation3 + $0x10] sm:$0xff] }
 0x2a7   : > { %v767_v11 = vsub.f32 0.0, %v763_v10  ;;  %1318 = vset.pattern.permute.xlu2 %v1543_v2  ;;  %v817_v24 = vld [vmem:[#allocation3 + $0x18] sm:$0xff]  ;;  %v815_v29 = vld [vmem:[#allocation3 + $0x8] sm:$0xff]  ;;  %v782_v34 = vld [vmem:[%s1798_s6] sm:$0xff] }
 0x2a8   : > { %v774_v13 = vmul.f32 1.442695, %v768_v3  ;;  %v770_v16 = vmul.f32 1.442695, %v766_v5  ;;  %v776_v17 = vmul.f32 1.442695, %v769_v12 }
 0x2a9   : > { %v772_v18 = vmul.f32 1.442695, %v767_v11  ;;  %v778_v37 = vld [vmem:[#allocation4 + $0x10] sm:$0xff]  ;;  %v783_v42 = vld [vmem:[%s1798_s6 + $0x8] sm:$0xff]  ;;  %v785_v43 = vld [vmem:[%s1798_s6 + $0x18] sm:$0xff] }
 0x2aa   : > { %1319 = vpow2.f32 %v774_v13  ;;  %v784_v46 = vld [vmem:[%s1798_s6 + $0x10] sm:$0xff]  ;;  %v779_v48 = vld [vmem:[#allocation4] sm:$0xff]  ;;  %v781_v53 = vld [vmem:[#allocation4 + $0x8] sm:$0xff] }
 0x2ab   : > { %1321 = vpow2.f32 %v770_v16  ;;  %v780_v55 = vld [vmem:[#allocation4 + $0x18] sm:$0xff] }
 0x2ac   : > { %1323 = vpow2.f32 %v776_v17 }
 0x2ad   : > { %1325 = vpow2.f32 %v772_v18 }
 0x2b0   : > { %v1320_v19 = vpop.eup %1319 }
 0x2b1   : > { %v1322_v20 = vpop.eup %1321  ;;  %798 = vperm.xlu1 %1317, %v1320_v19   ;;  %v820_v21 = vmul.f32 64.0, %v1320_v19 }
 0x2b2   : > { %v1324_v22 = vpop.eup %1323  ;;  %788 = vperm.xlu0 %1316, %v1322_v20   ;;  %v818_v7 = vmul.f32 64.0, %v1322_v20 }
 0x2b3   : > { %v1326_v25 = vpop.eup %1325  ;;  %v821_v26 = vmul.f32 64.0, %v1324_v22  ;;  %v824_v27 = vadd.f32 %v820_v21, %v816_v23 }
 0x2b4   : > { %v822_v14 = vadd.f32 %v818_v7, %v814_v6  ;;  %v819_v4 = vmul.f32 64.0, %v1326_v25 }
 0x2b5   : > { %v825_v28 = vadd.f32 %v821_v26, %v817_v24 }
 0x2b6   : > { %1327 = vrcp.f32 %v822_v14  ;;  %v823_v30 = vadd.f32 %v819_v4, %v815_v29 }
 0x2b7   : > { %1329 = vrcp.f32 %v825_v28 }
 0x2b8   : > { %1331 = vrcp.f32 %v824_v27 }
 0x2b9   : > { %803 = vperm.xlu1 %1317, %v1324_v22   ;;  %1333 = vrcp.f32 %v823_v30 }
 0x2ba   : > { %793 = vperm.xlu0 %1316, %v1326_v25  }
 0x2bc   : > { %v1328_v31 = vpop.eup %1327 }
 0x2bd   : > { %832 = vperm.xlu2 %1318, %v1328_v31   ;;  %v1330_v32 = vpop.eup %1329 }
 0x2be   : > { %v1332_v33 = vpop.eup %1331 }
 0x2bf   : > { %v1334_v9 = vpop.eup %1333 }
 0x2c1   : > { %847 = vperm.xlu1 %1317, %v1330_v32  }
 0x2c2   : > { %842 = vperm.xlu0 %1316, %v1332_v33  }
 0x2c5   : > { %837 = vperm.xlu2 %1318, %v1334_v9  }
 0x317   : > { %v833_v39 = vpop.permute.xlu2 %832 }
 0x31f   : > { %v838_v54 = vpop.permute.xlu2 %837 }
 0x323   : > { %v799_v35 = vpop.permute.xlu1 %798 }
 0x324   : > { %v789_v36 = vpop.permute.xlu0 %788  ;;  %v808_v51 = vmul.f32 %v799_v35, %v784_v46 }
 0x325   : > { %v806_v38 = vmul.f32 %v789_v36, %v782_v34 }
 0x326   : > { %v812_v59 = vadd.f32 %v808_v51, %v780_v55 }
 0x327   : > { %v810_v40 = vadd.f32 %v806_v38, %v778_v37 }
 0x329   : > { %v850_v15 = vmul.f32 %v833_v39, %v810_v40 }
 0x32b   : > { %854 = vst [vmem:[%s1806_s13] sm:$0xff] %v850_v15  ;;  %v804_v45 = vpop.permute.xlu1 %803 }
 0x32c   : > { %v794_v47 = vpop.permute.xlu0 %793  ;;  %v809_v50 = vmul.f32 %v804_v45, %v785_v43 }
 0x32d   : > { %v807_v49 = vmul.f32 %v794_v47, %v783_v42 }
 0x32e   : > { %v813_v57 = vadd.f32 %v809_v50, %v781_v53 }
 0x32f   : > { %v811_v52 = vadd.f32 %v807_v49, %v779_v48 }
 0x331   : > { %v851_v56 = vmul.f32 %v838_v54, %v811_v52 }
 0x333   : > { %855 = vst [vmem:[%s1806_s13 + $0x8] sm:$0xff] %v851_v56  ;;  %v848_v58 = vpop.permute.xlu1 %847 }
 0x334   : > { %v853_v41 = vmul.f32 %v848_v58, %v813_v57  ;;  %v843_v60 = vpop.permute.xlu0 %842 }
 0x335   : > { %v852_v61 = vmul.f32 %v843_v60, %v812_v59 }
 0x336   : > { %857 = vst [vmem:[%s1806_s13 + $0x18] sm:$0xff] %v853_v41 }
 0x337   : > { %856 = vst [vmem:[%s1806_s13 + $0x10] sm:$0xff] %v852_v61 }
 0x338 PF: > { %s1136_s24 = sshll.u32 %s1521_s26, 3  ;;  %s873_s8 = sshll.u32 %s1806_s13, 4  ;;  %s874_s8 = int_to_ptr.vmem [resolvable:$true] %s873_s8 }
 0x339   : > { %s870_s25 = sadd.s32 %s1136_s24, %s1781_s9  ;;  %s1996_s14 = sand.u32 1, %s1493_s19  }
 0x33a   : > { %s1137_s7 = sshll.u32 %s870_s25, 3  ;;  %s859_s29 = scalar_lea.sflag [#allocation7], %s1996_s14 }
 0x33b   : > { %s872_s28 = scalar_lea.hbm %s1958_s5, %s1137_s7  ;;  %s1415_s10 = scalar_lea.hbm %s1958_s5, 128 }
 0x33c   : > { %s875_s27 = sshll.u32 %s872_s28, 4  ;;  %s876_s27 = int_to_ptr.hbm [resolvable:$true] %s875_s27 }
 0x33d   : > { %s1409_s21 = sshra.s32 %s876_s27, 4  ;;  %s1410_s21 = int_to_ptr.hbm [resolvable:$true] %s1409_s21 }
 0x33e   : > { %s1411_s11 = scalar_lea.hbm %s1410_s21, 32  ;;  %p1416_p4 = scmp.lt.s32.totalorder %s1410_s21, %s1958_s5 }
 0x33f   : > { %p1412_p1 = scmp.ne.s32.totalorder %s1410_s21, %s1411_s11  ;;  %p1417_p8 = scmp.lt.s32.totalorder %s1415_s10, %s1411_s11 }
 0x341   : > { %p1413_p2 = pnand %p1412_p1, %p1701_p5  ;;  %p1418_p11 = por %p1417_p8, %p1416_p4 }
 0x343   : > { %p1414_p3 = pneg %p1413_p2 }
 0x345   : > { %p1419_p12 = pnand %p1418_p11, %p1414_p3 }
 0x347   : > { %1422 = shalt.err (!%p1419_p12)
}
 0x348   : > { %s1544_s18 = smov 128   ;;  %s1545_s15 = smov 8  }
 0x349   : > { %1163 = dma.vmem_to_hbm [thread:$0]  (%p1701_p5), %s874_s8, 512, %s876_s27, %s859_s29, %s1544_s18, %s1544_s18, %s1545_s15  }
 0x34a PF: > { %s1997_s13 = sld [smem:[#allocation14_spill]]  ;;  %p1177_p6 = scmp.ge.s32.totalorder %s1537_s30, 2 }
 0x34c   : > { %p1173_p10 = pnand %p1177_p6, %p1706_p7 }
 0x34e   : > { %p1174_p9 = pneg %p1173_p10 }
 0x350   : > { %s890_s1 = sand.u32 1, %s1997_s13  }
 0x351   : > { %s891_s20 = scalar_lea.sflag [#allocation7], %s890_s1 }
 0x352   : > { %1484 = dma.done.wait (%p1174_p9), %s891_s20, 512  }
 0x353   : > { %1486 = vsyncadd (%p1174_p9), %s891_s20, 4294966784  ;;  %s24_s30 = sadd.s32 1, %s1537_s30   ;;  %s2000_s17 = sld [smem:[#allocation15_spill]] }
 0x354   : > { %p1909_p13 = scmp.ge.s32.totalorder %s24_s30, 18   ;;  %s2001_s20 = sld [smem:[#allocation23_spill]] }
 0x355   : > { %s2002_s25 = sld [smem:[#allocation16_spill]]  ;;  %s2011_s18 = smov %s1493_s19 }
 0x356   : > { %s2003_s23 = sld [smem:[#allocation24_spill]]  ;;  %s2013_s21 = smov %s1505_s22 }
 0x357   : > { %s2004_s8 = sld [smem:[#allocation17_spill]] }
 0x358   : > { %s2005_s7 = sld [smem:[#allocation18_spill]] }
 0x359   : > { %s2006_s26 = sld [smem:[#allocation19_spill]]  ;;  %s2012_s19 = smov %s2000_s17 }
 0x35a   : > { %s2007_s27 = sld [smem:[#allocation20_spill]]  ;;  %23 = sbr.rel (!%p1909_p13) target bundleno = 15 (0xf), region = 119 }
 0x35b   : > { %s2008_s28 = sld [smem:[#allocation21_spill]]  ;;  %s2014_s22 = smov %s2002_s25 }
 0x35c   : > { %s2009_s29 = sld [smem:[#allocation22_spill]] }
 0x35d   : > { %s2015_s24 = smov %s2004_s8 }
 0x35e   : > { %s2016_s25 = smov %s2005_s7 }
 0x35f   :  { %897 = vsyncpa [#allocation6], 1 }
 0x360   :  { %899 = vsyncpa [#allocation6 + $0x1], 1 }
 0x361   :  { %900 = vsyncpa [#allocation9], 1 }
 0x362   :  { %902 = vsyncpa [#allocation9 + $0x1], 1 }
 0x363   :  { %903 = vsyncpa [#allocation7], 1 }
 0x364   :  { %905 = vsyncpa [#allocation7 + $0x1], 1 }

</bundles_post_ra>
